<compile_context>
chip_gen: v7x
topology: tpu7x:2x2x1
jax: 0.10.0
libtpu: 0.0.40
codegen_flags: <defaults>
</compile_context>

<pallas_src>
import functools

import jax
import jax.numpy as jnp
from jax.experimental import pallas as pl
from jax.experimental.pallas import tpu as pltpu

_BN_EPS = 1e-5
_HW = 16  # 4x4 kernel applied to a 1x1 input -> 16 spatial positions per channel


def _init_layer_kernel(noise_ref, wa_ref, wb_ref, gb_ref, sum_ref, exp_ref, o_ref,
                       *, inv_count):
    """One column tile of fused deconv(1x1)-matmul + BatchNorm (batch stats) + GLU.

    noise_ref : (B, nz)        bf16, full block (same every grid step), pre-scaled by 1/sigma
    wa_ref    : (nz, TILE_N)   bf16 columns of the first GLU half
    wb_ref    : (nz, TILE_N)   bf16 columns of the second GLU half
    gb_ref    : (4, TILE_N)    f32 rows = [gamma_a, beta_a, gamma_b, beta_b]
    sum_ref   : (TILE_N, G)    f32 0/1 matrix pooling the 16 spatial cols per channel
    exp_ref   : (G, TILE_N)    f32 0/1 matrix broadcasting per-channel -> columns
    o_ref     : (B, TILE_N)    f32 GLU output tile
    """
    n = noise_ref[...]

    # ConvTranspose2d(k=4, s=1, p=0) on a 1x1 input == plain matmul on the MXU.
    ya = jnp.dot(n, wa_ref[...], preferred_element_type=jnp.float32)
    yb = jnp.dot(n, wb_ref[...], preferred_element_type=jnp.float32)

    # Per-column sums over batch (sublane reduce), then pool the 16 spatial
    # columns of each channel with one skinny matmul.
    sa = jnp.sum(ya, axis=0, keepdims=True)
    qa = jnp.sum(ya * ya, axis=0, keepdims=True)
    sb = jnp.sum(yb, axis=0, keepdims=True)
    qb = jnp.sum(yb * yb, axis=0, keepdims=True)
    col_stats = jnp.concatenate([sa, qa, sb, qb], axis=0)             # (4, TILE_N)
    pooled = jnp.dot(col_stats, sum_ref[...],
                     preferred_element_type=jnp.float32) * inv_count  # (4, G)

    mean_a, ex2_a = pooled[0:1, :], pooled[1:2, :]
    mean_b, ex2_b = pooled[2:3, :], pooled[3:4, :]
    inv_a = jax.lax.rsqrt(ex2_a - mean_a * mean_a + _BN_EPS)          # biased var
    inv_b = jax.lax.rsqrt(ex2_b - mean_b * mean_b + _BN_EPS)

    # Broadcast per-channel [mean, inv] back to columns with one small matmul.
    grp = jnp.concatenate([mean_a, inv_a, mean_b, inv_b], axis=0)     # (4, G)
    cols = jnp.dot(grp, exp_ref[...],
                   preferred_element_type=jnp.float32)                # (4, TILE_N)

    # Fold BN affine into a single scale/shift per column.
    scale_a = cols[1:2, :] * gb_ref[0:1, :]
    shift_a = gb_ref[1:2, :] - cols[0:1, :] * scale_a
    scale_b = cols[3:4, :] * gb_ref[2:3, :]
    shift_b = gb_ref[3:4, :] - cols[2:3, :] * scale_b

    na = ya * scale_a + shift_a
    nb = yb * scale_b + shift_b

    # Exact sigmoid with a single EUP transcendental: sigma(x) = 0.5*(tanh(x/2)+1).
    gate = 0.5 * (jnp.tanh(0.5 * nb) + 1.0)
    o_ref[...] = (na * gate).astype(o_ref.dtype)


def _vmem_bytes(batch, nz, tile_n):
    """Double-buffered VMEM footprint estimate for one grid step."""
    g = tile_n // _HW
    w = 2 * 2 * nz * tile_n * 2          # 2 weight operands x 2 buffers, bf16
    out = 2 * batch * tile_n * 4         # output, f32
    gb = 2 * 4 * tile_n * 4              # gamma/beta rows, f32
    mats = 2 * 2 * tile_n * g * 4        # sum + expand 0/1 matrices, f32
    noise = 2 * batch * nz * 2           # noise, bf16
    return w + out + gb + mats + noise


def _pick_tile(n_pad, batch, nz, budget=20 * 1024 * 1024):
    """Largest column tile (multiple of 128, divides n_pad) fitting the VMEM budget."""
    tile = 128
    for t in (2048, 1024, 512, 256, 128):
        if n_pad % t == 0 and _vmem_bytes(batch, nz, t) <= budget:
            tile = t
            break
    # Prefer >= 2 tiles so dimension_semantics=("parallel",) can split the grid
    # across v7x's two TensorCores (negligible per-step cost on v5e/v6e).
    if n_pad // tile == 1 and tile >= 256:
        tile //= 2
    return tile


def init_layer_forward(noise, weight, gamma, beta, u, eps_sn=1e-12):
    """noise: (B, ...) flattened to (B, nz); weight: (nz, 2C, 4, 4) raw
    ConvTranspose2d weight; gamma/beta: (2C,) BatchNorm affine; u: (2C,)
    spectral-norm power-iteration vector.  Returns (out_NCHW, u_new)."""
    B = noise.shape[0]
    nz, two_c, kh, kw = weight.shape
    C = two_c // 2
    hw = kh * kw
    assert hw == _HW, "InitLayer uses a 4x4 deconv kernel"
    ncol = C * hw                                  # columns per GLU half

    noise2d = noise.reshape(B, -1).astype(jnp.float32)   # == view(B, -1, 1, 1)

    # --- spectral norm (PyTorch: dim=1 for ConvTranspose2d, 1 power iteration) ---
    # Computed directly on the (nz, 2C, 4, 4) layout: no transposed weight copy.
    v = jnp.einsum('iohw,o->ihw', weight, u)                   # W^T u  (nz,4,4)
    v = v / jnp.maximum(jnp.sqrt(jnp.sum(v * v)), eps_sn)
    wv = jnp.einsum('iohw,ihw->o', weight, v)                  # W v    (2C,)
    u_new = wv / jnp.maximum(jnp.sqrt(jnp.sum(wv * wv)), eps_sn)
    sigma = jnp.dot(u_new, wv)

    # Fold 1/sigma into the tiny noise matrix instead of rewriting the weight.
    noise_bf = (noise2d / sigma).astype(jnp.bfloat16)

    # --- layout: (nz, 2C, 4, 4) -> two halves (nz, ncol), channel-major, hw minor.
    # Cast + pad fused in one pass per half; no f32 intermediate, no concat.
    n_pad = max(128, ((ncol + 127) // 128) * 128)   # lane-dense output tiles
    pad = n_pad - ncol
    w2d = weight.reshape(nz, 2 * ncol)
    wa = jnp.pad(w2d[:, :ncol].astype(jnp.bfloat16), ((0, 0), (0, pad)))
    wb = jnp.pad(w2d[:, ncol:].astype(jnp.bfloat16), ((0, 0), (0, pad)))

    # --- BN affine, broadcast across the 16 spatial columns of each channel.
    # Pad fills (gamma=1, beta=0) keep padded columns finite (and exactly zero).
    def expand(p, fill):
        cols = jnp.repeat(p.astype(jnp.float32), hw)
        return jnp.pad(cols, (0, pad), constant_values=fill)

    gb4 = jnp.stack([expand(gamma[:C], 1.0), expand(beta[:C], 0.0),
                     expand(gamma[C:], 1.0), expand(beta[C:], 0.0)], axis=0)

    # --- tiling + skinny pooling matrices (same for every tile) ---
    tile_n = _pick_tile(n_pad, B, nz)
    num_tiles = n_pad // tile_n
    # BN-correctness guards: whole channels per tile, batch never blocked.
    assert tile_n % hw == 0
    assert n_pad % tile_n == 0
    g = tile_n // hw
    grp_of_col = jnp.arange(tile_n) // hw
    sum_mat = (grp_of_col[:, None] == jnp.arange(g)[None, :]).astype(jnp.float32)
    exp_mat = sum_mat.T

    grid_spec = pltpu.PrefetchScalarGridSpec(
        num_scalar_prefetch=0,
        grid=(num_tiles,),
        in_specs=[
            pl.BlockSpec((B, nz), lambda j: (0, 0)),          # noise (resident)
            pl.BlockSpec((nz, tile_n), lambda j: (0, j)),     # half-a columns
            pl.BlockSpec((nz, tile_n), lambda j: (0, j)),     # half-b columns
            pl.BlockSpec((4, tile_n), lambda j: (0, j)),      # gamma/beta rows
            pl.BlockSpec((tile_n, g), lambda j: (0, 0)),      # pool matrix
            pl.BlockSpec((g, tile_n), lambda j: (0, 0)),      # expand matrix
        ],
        out_specs=pl.BlockSpec((B, tile_n), lambda j: (0, j)),
    )

    vmem_limit = int(min(max(2 * _vmem_bytes(B, nz, tile_n), 16 * 1024 * 1024),
                         48 * 1024 * 1024))
    cost = pl.CostEstimate(
        flops=int(4 * B * nz * n_pad + 16 * n_pad * g * num_tiles),
        transcendentals=int(B * n_pad),
        bytes_accessed=int(2 * (nz * n_pad * 2) + B * nz * 2 + B * n_pad * 4
                           + 4 * n_pad * 4 + 2 * tile_n * g * 4),
    )

    kernel = functools.partial(_init_layer_kernel, inv_count=1.0 / float(B * hw))

    out_pad = pl.pallas_call(
        kernel,
        out_shape=jax.ShapeDtypeStruct((B, n_pad), jnp.float32),
        grid_spec=grid_spec,
        compiler_params=pltpu.CompilerParams(
            dimension_semantics=("parallel",),      # shard tiles across v7x's 2 TCs
            vmem_limit_bytes=vmem_limit,
        ),
        cost_estimate=cost,
    )(noise_bf, wa, wb, gb4, sum_mat, exp_mat)

    out = out_pad[:, :ncol].reshape(B, C, kh, kw)    # NCHW
    return out, u_new


if __name__ == "__main__":
    B, nz, channel = 2, 32, 4          # ConvTranspose out channels = 2*channel = 8
    key = jax.random.PRNGKey(0)
    k_noise, k_w, k_g, k_b, k_u = jax.random.split(key, 5)

    noise = jax.random.normal(k_noise, (B, nz), dtype=jnp.float32)
    # ConvTranspose2d weight shape: (in_channels=nz, out_channels=2C, 4, 4)
    weight = 0.1 * jax.random.normal(k_w, (nz, 2 * channel, 4, 4), dtype=jnp.float32)
    gamma = 1.0 + 0.1 * jax.random.normal(k_g, (2 * channel,), dtype=jnp.float32)
    beta = 0.1 * jax.random.normal(k_b, (2 * channel,), dtype=jnp.float32)
    u0 = jax.random.normal(k_u, (2 * channel,), dtype=jnp.float32)
    u0 = u0 / jnp.linalg.norm(u0)

    out, u_new = init_layer_forward(noise, weight, gamma, beta, u0)
    jax.block_until_ready((out, u_new))

    # Pure-JAX f32 reference (spectral norm + training-mode BN + GLU).
    w_mat = jnp.transpose(weight, (1, 0, 2, 3)).reshape(2 * channel, -1)
    v = w_mat.T @ u0
    v = v / jnp.maximum(jnp.linalg.norm(v), 1e-12)
    wv = w_mat @ v
    u_ref = wv / jnp.maximum(jnp.linalg.norm(wv), 1e-12)
    sigma = u_ref @ wv
    y = jnp.einsum('bi,iohw->bohw', noise, weight) / sigma
    mean = y.mean(axis=(0, 2, 3), keepdims=True)
    var = ((y - mean) ** 2).mean(axis=(0, 2, 3), keepdims=True)
    yn = (y - mean) * jax.lax.rsqrt(var + _BN_EPS)
    yn = yn * gamma.reshape(1, -1, 1, 1) + beta.reshape(1, -1, 1, 1)
    ref = yn[:, :channel] * jax.nn.sigmoid(yn[:, channel:])

    assert out.shape == (B, channel, 4, 4)
    assert u_new.shape == (2 * channel,)
    assert bool(jnp.all(jnp.isfinite(out)))
    err = float(jnp.max(jnp.abs(out - ref)))
    assert err < 0.1, f"max abs err vs reference: {err}"
    print("KERNEL_OK")
</pallas_src>

<mosaic_0001>
module attributes {stable_mosaic.version = 11 : i64} {
  func.func @_init_layer_kernel(%arg0: i32, %arg1: memref<2x32xbf16, #tpu.memory_space<vmem>>, %arg2: memref<32x128xbf16, #tpu.memory_space<vmem>>, %arg3: memref<32x128xbf16, #tpu.memory_space<vmem>>, %arg4: memref<4x128xf32, #tpu.memory_space<vmem>>, %arg5: memref<128x8xf32, #tpu.memory_space<vmem>>, %arg6: memref<8x128xf32, #tpu.memory_space<vmem>>, %arg7: memref<2x128xf32, #tpu.memory_space<vmem>>) attributes {dimension_semantics = [#tpu.dimension_semantics<parallel>], iteration_bounds = array<i64: 1>, scalar_prefetch = 0 : i64, scratch_operands = 0 : i64, tpu.core_type = #tpu.core_type<tc>, window_params = [{pipeline_mode = #tpu.pipeline_mode<synchronous>, transform_indices = @transform_0, window_bounds = array<i64: 2, 32>}, {transform_indices = @transform_1, window_bounds = array<i64: 32, 128>}, {transform_indices = @transform_2, window_bounds = array<i64: 32, 128>}, {transform_indices = @transform_3, window_bounds = array<i64: 4, 128>}, {pipeline_mode = #tpu.pipeline_mode<synchronous>, transform_indices = @transform_4, window_bounds = array<i64: 128, 8>}, {pipeline_mode = #tpu.pipeline_mode<synchronous>, transform_indices = @transform_5, window_bounds = array<i64: 8, 128>}, {transform_indices = @transform_6, window_bounds = array<i64: 2, 128>}]} {
    %c0 = arith.constant 0 : index
    %c0_0 = arith.constant 0 : index
    %0 = vector.load %arg1[%c0, %c0_0] : memref<2x32xbf16, #tpu.memory_space<vmem>>, vector<2x32xbf16>
    %c0_1 = arith.constant 0 : index
    %c0_2 = arith.constant 0 : index
    %1 = vector.load %arg2[%c0_1, %c0_2] : memref<32x128xbf16, #tpu.memory_space<vmem>>, vector<32x128xbf16>
    %cst = arith.constant dense<0.000000e+00> : vector<2x128xf32>
    %2 = tpu.matmul %0, %1, %cst {dimension_numbers = #tpu.dot_dimension_numbers<[1], [0], [0], [1], [0, 0, 1, 1], [], []>} : vector<2x32xbf16>, vector<32x128xbf16>, vector<2x128xf32> -> vector<2x128xf32>
    %c0_3 = arith.constant 0 : index
    %c0_4 = arith.constant 0 : index
    %3 = vector.load %arg3[%c0_3, %c0_4] : memref<32x128xbf16, #tpu.memory_space<vmem>>, vector<32x128xbf16>
    %cst_5 = arith.constant dense<0.000000e+00> : vector<2x128xf32>
    %4 = tpu.matmul %0, %3, %cst_5 {dimension_numbers = #tpu.dot_dimension_numbers<[1], [0], [0], [1], [0, 0, 1, 1], [], []>} : vector<2x32xbf16>, vector<32x128xbf16>, vector<2x128xf32> -> vector<2x128xf32>
    %cst_6 = arith.constant dense<0.000000e+00> : vector<128xf32>
    %5 = vector.multi_reduction <add>, %2, %cst_6 [0] : vector<2x128xf32> to vector<128xf32>
    %6 = vector.shape_cast %5 : vector<128xf32> to vector<1x128xf32>
    %7 = arith.mulf %2, %2 : vector<2x128xf32>
    %cst_7 = arith.constant dense<0.000000e+00> : vector<128xf32>
    %8 = vector.multi_reduction <add>, %7, %cst_7 [0] : vector<2x128xf32> to vector<128xf32>
    %9 = vector.shape_cast %8 : vector<128xf32> to vector<1x128xf32>
    %cst_8 = arith.constant dense<0.000000e+00> : vector<128xf32>
    %10 = vector.multi_reduction <add>, %4, %cst_8 [0] : vector<2x128xf32> to vector<128xf32>
    %11 = vector.shape_cast %10 : vector<128xf32> to vector<1x128xf32>
    %12 = arith.mulf %4, %4 : vector<2x128xf32>
    %cst_9 = arith.constant dense<0.000000e+00> : vector<128xf32>
    %13 = vector.multi_reduction <add>, %12, %cst_9 [0] : vector<2x128xf32> to vector<128xf32>
    %14 = vector.shape_cast %13 : vector<128xf32> to vector<1x128xf32>
    %15 = tpu.concatenate %6, %9, %11, %14 in 0 : vector<1x128xf32>, vector<1x128xf32>, vector<1x128xf32>, vector<1x128xf32> -> vector<4x128xf32>
    %c0_10 = arith.constant 0 : index
    %c0_11 = arith.constant 0 : index
    %16 = vector.load %arg5[%c0_10, %c0_11] : memref<128x8xf32, #tpu.memory_space<vmem>>, vector<128x8xf32>
    %cst_12 = arith.constant dense<0.000000e+00> : vector<4x8xf32>
    %17 = tpu.matmul %15, %16, %cst_12 {dimension_numbers = #tpu.dot_dimension_numbers<[1], [0], [0], [1], [0, 0, 1, 1], [], []>} : vector<4x128xf32>, vector<128x8xf32>, vector<4x8xf32> -> vector<4x8xf32>
    %cst_13 = arith.constant 3.125000e-02 : f32
    %18 = vector.broadcast %cst_13 : f32 to vector<4x8xf32>
    %19 = arith.mulf %17, %18 : vector<4x8xf32>
    %20 = vector.extract_strided_slice %19 {offsets = [0, 0], sizes = [1, 8], strides = [1, 1]} : vector<4x8xf32> to vector<1x8xf32>
    %21 = vector.extract_strided_slice %19 {offsets = [1, 0], sizes = [1, 8], strides = [1, 1]} : vector<4x8xf32> to vector<1x8xf32>
    %22 = vector.extract_strided_slice %19 {offsets = [2, 0], sizes = [1, 8], strides = [1, 1]} : vector<4x8xf32> to vector<1x8xf32>
    %23 = vector.extract_strided_slice %19 {offsets = [3, 0], sizes = [1, 8], strides = [1, 1]} : vector<4x8xf32> to vector<1x8xf32>
    %24 = arith.mulf %20, %20 : vector<1x8xf32>
    %25 = arith.subf %21, %24 : vector<1x8xf32>
    %cst_14 = arith.constant 9.99999974E-6 : f32
    %26 = vector.broadcast %cst_14 : f32 to vector<1x8xf32>
    %27 = arith.addf %25, %26 : vector<1x8xf32>
    %28 = math.rsqrt %27 : vector<1x8xf32>
    %29 = arith.mulf %22, %22 : vector<1x8xf32>
    %30 = arith.subf %23, %29 : vector<1x8xf32>
    %cst_15 = arith.constant 9.99999974E-6 : f32
    %31 = vector.broadcast %cst_15 : f32 to vector<1x8xf32>
    %32 = arith.addf %30, %31 : vector<1x8xf32>
    %33 = math.rsqrt %32 : vector<1x8xf32>
    %34 = tpu.concatenate %20, %28, %22, %33 in 0 : vector<1x8xf32>, vector<1x8xf32>, vector<1x8xf32>, vector<1x8xf32> -> vector<4x8xf32>
    %c0_16 = arith.constant 0 : index
    %c0_17 = arith.constant 0 : index
    %35 = vector.load %arg6[%c0_16, %c0_17] : memref<8x128xf32, #tpu.memory_space<vmem>>, vector<8x128xf32>
    %cst_18 = arith.constant dense<0.000000e+00> : vector<4x128xf32>
    %36 = tpu.matmul %34, %35, %cst_18 {dimension_numbers = #tpu.dot_dimension_numbers<[1], [0], [0], [1], [0, 0, 1, 1], [], []>} : vector<4x8xf32>, vector<8x128xf32>, vector<4x128xf32> -> vector<4x128xf32>
    %37 = vector.extract_strided_slice %36 {offsets = [1, 0], sizes = [1, 128], strides = [1, 1]} : vector<4x128xf32> to vector<1x128xf32>
    %c0_19 = arith.constant 0 : index
    %c0_20 = arith.constant 0 : index
    %38 = vector.load %arg4[%c0_19, %c0_20] : memref<4x128xf32, #tpu.memory_space<vmem>>, vector<1x128xf32>
    %39 = arith.mulf %37, %38 : vector<1x128xf32>
    %c1 = arith.constant 1 : index
    %c0_21 = arith.constant 0 : index
    %40 = vector.load %arg4[%c1, %c0_21] : memref<4x128xf32, #tpu.memory_space<vmem>>, vector<1x128xf32>
    %41 = vector.extract_strided_slice %36 {offsets = [0, 0], sizes = [1, 128], strides = [1, 1]} : vector<4x128xf32> to vector<1x128xf32>
    %42 = arith.mulf %41, %39 : vector<1x128xf32>
    %43 = arith.subf %40, %42 : vector<1x128xf32>
    %44 = vector.extract_strided_slice %36 {offsets = [3, 0], sizes = [1, 128], strides = [1, 1]} : vector<4x128xf32> to vector<1x128xf32>
    %c2 = arith.constant 2 : index
    %c0_22 = arith.constant 0 : index
    %45 = vector.load %arg4[%c2, %c0_22] : memref<4x128xf32, #tpu.memory_space<vmem>>, vector<1x128xf32>
    %46 = arith.mulf %44, %45 : vector<1x128xf32>
    %c3 = arith.constant 3 : index
    %c0_23 = arith.constant 0 : index
    %47 = vector.load %arg4[%c3, %c0_23] : memref<4x128xf32, #tpu.memory_space<vmem>>, vector<1x128xf32>
    %48 = vector.extract_strided_slice %36 {offsets = [2, 0], sizes = [1, 128], strides = [1, 1]} : vector<4x128xf32> to vector<1x128xf32>
    %49 = arith.mulf %48, %46 : vector<1x128xf32>
    %50 = arith.subf %47, %49 : vector<1x128xf32>
    %51 = vector.broadcast %39 : vector<1x128xf32> to vector<2x128xf32>
    %52 = arith.mulf %2, %51 : vector<2x128xf32>
    %53 = vector.broadcast %43 : vector<1x128xf32> to vector<2x128xf32>
    %54 = arith.addf %52, %53 : vector<2x128xf32>
    %55 = vector.broadcast %46 : vector<1x128xf32> to vector<2x128xf32>
    %56 = arith.mulf %4, %55 : vector<2x128xf32>
    %57 = vector.broadcast %50 : vector<1x128xf32> to vector<2x128xf32>
    %58 = arith.addf %56, %57 : vector<2x128xf32>
    %cst_24 = arith.constant 5.000000e-01 : f32
    %59 = vector.broadcast %cst_24 : f32 to vector<2x128xf32>
    %60 = arith.mulf %59, %58 : vector<2x128xf32>
    %61 = math.tanh %60 : vector<2x128xf32>
    %cst_25 = arith.constant 1.000000e+00 : f32
    %62 = vector.broadcast %cst_25 : f32 to vector<2x128xf32>
    %63 = arith.addf %61, %62 : vector<2x128xf32>
    %cst_26 = arith.constant 5.000000e-01 : f32
    %64 = vector.broadcast %cst_26 : f32 to vector<2x128xf32>
    %65 = arith.mulf %64, %63 : vector<2x128xf32>
    %66 = arith.mulf %54, %65 : vector<2x128xf32>
    %c0_27 = arith.constant 0 : index
    %c0_28 = arith.constant 0 : index
    %67 = vector.load %arg7[%c0_27, %c0_28] : memref<2x128xf32, #tpu.memory_space<vmem>>, vector<2x128xf32>
    tpu.vector_store %arg7[%c0_27, %c0_28], %66 {strides = array<i32>} : memref<2x128xf32, #tpu.memory_space<vmem>>, vector<2x128xf32>,
    return
  }
  func.func @transform_0(%arg0: i32) -> (i32, i32) {
    %c0_i32 = arith.constant 0 : i32
    %c0_i32_0 = arith.constant 0 : i32
    %c0_i32_1 = arith.constant 0 : i32
    return %c0_i32, %c0_i32_0 : i32, i32
  }
  func.func @transform_1(%arg0: i32) -> (i32, i32) {
    %c0_i32 = arith.constant 0 : i32
    %c0_i32_0 = arith.constant 0 : i32
    return %c0_i32, %arg0 : i32, i32
  }
  func.func @transform_2(%arg0: i32) -> (i32, i32) {
    %c0_i32 = arith.constant 0 : i32
    %c0_i32_0 = arith.constant 0 : i32
    return %c0_i32, %arg0 : i32, i32
  }
  func.func @transform_3(%arg0: i32) -> (i32, i32) {
    %c0_i32 = arith.constant 0 : i32
    %c0_i32_0 = arith.constant 0 : i32
    return %c0_i32, %arg0 : i32, i32
  }
  func.func @transform_4(%arg0: i32) -> (i32, i32) {
    %c0_i32 = arith.constant 0 : i32
    %c0_i32_0 = arith.constant 0 : i32
    %c0_i32_1 = arith.constant 0 : i32
    return %c0_i32, %c0_i32_0 : i32, i32
  }
  func.func @transform_5(%arg0: i32) -> (i32, i32) {
    %c0_i32 = arith.constant 0 : i32
    %c0_i32_0 = arith.constant 0 : i32
    %c0_i32_1 = arith.constant 0 : i32
    return %c0_i32, %c0_i32_0 : i32, i32
  }
  func.func @transform_6(%arg0: i32) -> (i32, i32) {
    %c0_i32 = arith.constant 0 : i32
    %c0_i32_0 = arith.constant 0 : i32
    return %c0_i32, %arg0 : i32, i32
  }
}

</mosaic_0001>

<bundles_post_ra>
// kernel: tpu_custom_call.1
= control target key start
LH: loop header
LB: loop body
LE: loop exit
PB: predicated region body
PF: predicated region fallthrough
CT: control target
= control target key end

     0   :  { %v563_v1 = vmov 0.0   ;;  %vm564_vm0 = vmmov 0   ;;  %v565_v5 = vmov 0.0|0.0   ;;  %s718_s0 = inlined_call_operand.vmem [shape: bf16[2,32], index: 0, kind: input, shape index: {}]   ;;  %s719_s1 = inlined_call_operand.vmem [shape: bf16[32,128], index: 1, kind: input, shape index: {}]   ;;  %s720_s2 = inlined_call_operand.vmem [shape: bf16[32,128], index: 2, kind: input, shape index: {}]   ;;  %s721_s3 = inlined_call_operand.vmem [shape: f32[4,128], index: 3, kind: input, shape index: {}]   ;;  %s722_s4 = inlined_call_operand.vmem [shape: f32[128,8], index: 4, kind: input, shape index: {}]   ;;  %s723_s5 = inlined_call_operand.vmem [shape: f32[8,128], index: 5, kind: input, shape index: {}]   ;;  %s724_s6 = inlined_call_operand.hbm [shape: f32[2,128], index: 6, kind: output, shape index: {}]  }
   0x1   :  { %v531_v0 = vld [vmem:[%s719_s1] sm:$0xff]   ;;  %447 = vmatprep.subr.bf16.mxu1 %v563_v1  ;;  %v532_v2 = vld [vmem:[%s719_s1 + $0x8] sm:$0xff]   ;;  %451 = vmatprep.mubr.msk.bf16.mxu1 %vm564_vm0, %v563_v1  ;;  %v180_v7 = vld [vmem:[%s722_s4 + $0x10] sm:$0xff] }
   0x2   :  { %448 = vmatpush3.bf16.msra.mxu1 %v531_v0  ;;  %495 = vmatprep.mubr.msk.f32.mxu0 %vm564_vm0, %v563_v1  ;;  %v178_v3 = vld [vmem:[%s722_s4] sm:$0xff]  ;;  %v179_v4 = vld [vmem:[%s722_s4 + $0x8] sm:$0xff]  ;;  %v181_v8 = vld [vmem:[%s722_s4 + $0x18] sm:$0xff] }
   0x3   :  { %449 = vmatprep.subr.bf16.mxu1 %v563_v1  ;;  %503 = vmatprep.subr.bf16.mxu0 %v565_v5  ;;  %v504_v6 = vpack.c.bf16 %v179_v4, %v178_v3 }
   0x4   :  { %11 = vsyncpa [#allocation3], 0  ;;  %v25_v9 = vld [vmem:[%s718_s0] sm:$0x1]  ;;  %vm42_vm1 = vcmask 261120   ;;  %v507_v11 = vpack.c.bf16 %v181_v8, %v180_v7  ;;  %v534_v12 = vld [vmem:[%s720_s2 + $0x8] sm:$0xff]  }
   0x5   :  { %v533_v10 = vld [vmem:[%s720_s2] sm:$0xff]   ;;  %505 = vmatpush3.bf16.msra.mxu0 %v504_v6  ;;  %v183_v14 = vld [vmem:[%s722_s4 + $0x28] sm:$0xff]  ;;  %v184_v16 = vld [vmem:[%s722_s4 + $0x30] sm:$0xff]  ;;  %vm142_vm2 = vcmask 1041408   ;;  %vm173_vm3 = vcmask 1040384   ;;  %vm176_vm4 = vcmask 1042432  }
   0x6   :  { %450 = vmatpush3.bf16.msra.mxu1 %v532_v2  ;;  %506 = vmatprep.subr.bf16.mxu0 %v565_v5  ;;  %v182_v13 = vld [vmem:[%s722_s4 + $0x20] sm:$0xff]  ;;  %v185_v17 = vld [vmem:[%s722_s4 + $0x38] sm:$0xff]  ;;  %v187_v20 = vld [vmem:[%s722_s4 + $0x48] sm:$0xff]  ;;  %vm276_vm5 = vcmask 64512   ;;  %s566_s17 = smov [#allocation2]  }
   0x7   :  { %455 = vmatprep.subr.bf16.mxu1 %v563_v1  ;;  %v510_v15 = vpack.c.bf16 %v183_v14, %v182_v13  ;;  %v513_v18 = vpack.c.bf16 %v185_v17, %v184_v16  ;;  %v186_v19 = vld [vmem:[%s722_s4 + $0x40] sm:$0xff]  ;;  %v188_v22 = vld [vmem:[%s722_s4 + $0x50] sm:$0xff]  ;;  %v189_v23 = vld [vmem:[%s722_s4 + $0x58] sm:$0xff]  ;;  %s407_s18 = sshll.u32 %s566_s17, 4  ;;  %s408_s18 = int_to_ptr.vmem [resolvable:$true] %s407_s18 }
   0x8   :  { %v516_v21 = vpack.c.bf16 %v187_v20, %v186_v19  ;;  %v519_v24 = vpack.c.bf16 %v189_v23, %v188_v22  ;;  %v190_v25 = vld [vmem:[%s722_s4 + $0x60] sm:$0xff]  ;;  %v191_v26 = vld [vmem:[%s722_s4 + $0x68] sm:$0xff]  ;;  %v192_v28 = vld [vmem:[%s722_s4 + $0x70] sm:$0xff]  ;;  %v375_v20 = vlaneseq  ;;  %s539_s19 = scalar_lea.vmem %s408_s18, 32  ;;  %p544_p1 = scmp.lt.s32.totalorder %s408_s18, %s408_s18 }
   0x9   :  { %452 = vmatmul.mubr.msk.bf16.vlgmr.msra.gmra.mrb[0].mxu1 %vm42_vm1, %v25_v9  ;;  %508 = vmatpush3.bf16.msra.mxu0 %v507_v11  ;;  %v522_v27 = vpack.c.bf16 %v191_v26, %v190_v25  ;;  %v193_v29 = vld [vmem:[%s722_s4 + $0x78] sm:$0xff]  ;;  %v275_v8 = vld [vmem:[%s723_s5] sm:$0xff]  ;;  %p540_p0 = scmp.ne.s32.totalorder %s408_s18, %s539_s19  ;;  %p545_p2 = scmp.lt.s32.totalorder %s539_s19, %s539_s19 }
   0xa   :  { %456 = vmatpush3.bf16.msra.mxu1 %v533_v10  ;;  %459 = vmatprep.mubr.msk.bf16.mxu1 %vm564_vm0, %v563_v1  ;;  %v525_v30 = vpack.c.bf16 %v193_v29, %v192_v28  ;;  %v361_v22 = vld [vmem:[%s721_s3 + $0x2] sm:$0x1]  ;;  %v376_v23 = vshrl.u32 %v375_v20, 7 }
   0xb   :  { %457 = vmatprep.subr.bf16.mxu1 %v563_v1  ;;  %509 = vmatprep.subr.bf16.mxu0 %v565_v5  ;;  %v363_v25 = vrot.slane %v361_v22, 5  ;;  %p546_p3 = por %p545_p2, %p544_p1 }
   0xc   :  { %v377_v26 = vsub.s32 1, %v376_v23 }
   0xd   :  { %511 = vmatpush3.bf16.msra.mxu0 %v510_v15  ;;  %p547_p4 = pnand %p546_p3, %p540_p0 }
   0xe   :  { %458 = vmatpush3.bf16.msra.mxu1 %v534_v12  ;;  %512 = vmatprep.subr.bf16.mxu0 %v565_v5 }
   0xf   :  { %498 = vmatprep.subr.mxu1 %v563_v1 }
  0x11   :  { %460 = vmatmul.mubr.msk.bf16.vlgmr.msra.gmra.mrb[4].mxu1 %vm42_vm1, %v25_v9  ;;  %514 = vmatpush3.bf16.msra.mxu0 %v513_v18 }
  0x12   :  { %500 = vmatprep.mubr.msk.f32.mxu1 %vm564_vm0, %v563_v1  ;;  %515 = vmatprep.subr.bf16.mxu0 %v565_v5 }
  0x13   :  { %499 = vmatpush3.msra.mxu1 %v275_v8 }
  0x15   :  { %517 = vmatpush3.bf16.msra.mxu0 %v516_v21  ;;  %v350_v21 = vld [vmem:[%s721_s3] sm:$0x1] }
  0x16   :  { %518 = vmatprep.subr.bf16.mxu0 %v565_v5 }
  0x19   :  { %520 = vmatpush3.bf16.msra.mxu0 %v519_v24  ;;  %v352_v24 = vrot.slane %v350_v21, 7 }
  0x1a   :  { %521 = vmatprep.subr.bf16.mxu0 %v565_v5 }
  0x1d   :  { %523 = vmatpush3.bf16.msra.mxu0 %v522_v27  ;;  %v387_v27 = vsub.s32 3, %v376_v23 }
  0x1e   :  { %524 = vmatprep.subr.bf16.mxu0 %v565_v5 }
  0x21   :  { %526 = vmatpush3.bf16.msra.mxu0 %v525_v30 }
  0xdc   :  { %v669_v31 = vpop.f32.mrb[0].mxu1 }
  0xdd   :  { %v143_v32 = vsel %vm142_vm2, %v669_v31, 0.0  ;;  %v150_v33 = vmul.f32 %v669_v31, %v669_v31  ;;  %v453_v34 = vpop.f32.mrb[1].mxu1 }
  0xde   :  { %v144_v35 = vrot.slane %v143_v32, 4  ;;  %v83_v36 = vpop.f32.mrb[2].mxu1 }
  0xdf   :  { %v151_v37 = vsel %vm142_vm2, %v150_v33, 0.0  ;;  %v454_v38 = vpop.f32.mrb[3].mxu1 }
  0xe0   :  { %v145_v39 = vadd.f32 %v144_v35, %v143_v32  ;;  %v152_v40 = vrot.slane %v151_v37, 4  ;;  %v382_v38 = vsub.s32 0, %v376_v23 }
  0xe2   :  { %v153_v41 = vadd.f32 %v152_v40, %v151_v37  ;;  %v146_v42 = vrot.slane %v145_v39, 2  ;;  %v355_v37 = vld [vmem:[%s721_s3 + $0x1] sm:$0x1] }
  0xe4   :  { %v154_v43 = vrot.slane %v153_v41, 2  ;;  %v676_v44 = vpop.f32.mrb[4].mxu1  ;;  %v147_v51 = vadd.f32 %v146_v42, %v145_v39 }
  0xe5   :  { %v158_v45 = vsel %vm142_vm2, %v676_v44, 0.0  ;;  %v165_v46 = vmul.f32 %v676_v44, %v676_v44  ;;  %v461_v47 = vpop.f32.mrb[5].mxu1 }
  0xe6   :  { %v155_v48 = vadd.f32 %v154_v43, %v153_v41  ;;  %v159_v49 = vrot.slane %v158_v45, 4  ;;  %v139_v50 = vpop.f32.mrb[6].mxu1  ;;  %v148_v59 = vrot.slane %v147_v51, 1  ;;  %v366_v43 = vld [vmem:[%s721_s3 + $0x3] sm:$0x1] }
  0xe7   :  { %v166_v52 = vsel %vm142_vm2, %v165_v46, 0.0  ;;  %v462_v53 = vpop.f32.mrb[7].mxu1 }
  0xe8   :  { %v160_v54 = vadd.f32 %v159_v49, %v158_v45  ;;  %v167_v55 = vrot.slane %v166_v52, 4  ;;  %v156_v56 = vrot.slane %v155_v48, 1  ;;  %v149_v1 = vadd.f32 %v148_v59, %v147_v51 }
  0xea   :  { %v161_v57 = vrot.slane %v160_v54, 2  ;;  %v168_v58 = vadd.f32 %v167_v55, %v166_v52  ;;  %v157_v62 = vadd.f32 %v156_v56, %v155_v48 }
  0xec   :  { %v162_v60 = vadd.f32 %v161_v57, %v160_v54  ;;  %v169_v61 = vrot.slane %v168_v58, 2  ;;  %v174_v4 = vsel %vm173_vm3, %v149_v1, %v157_v62 }
  0xee   :  { %v163_v63 = vrot.slane %v162_v60, 1  ;;  %v170_v0 = vadd.f32 %v169_v61, %v168_v58 }
  0xf0   :  { %v164_v2 = vadd.f32 %v163_v63, %v162_v60  ;;  %v171_v3 = vrot.slane %v170_v0, 1 }
  0xf2   :  { %v172_v5 = vadd.f32 %v171_v3, %v170_v0  ;;  %v175_v6 = vsel %vm142_vm2, %v174_v4, %v164_v2 }
  0xf4   :  { %v177_v7 = vsel %vm176_vm4, %v175_v6, %v172_v5 }
  0xf5   :  { %496 = vmatmul.mubr.f32.vlgmr.msra.gmra.mrb[0].mxu0 %v177_v7 }
 0x1c8   :  { %v260_v9 = vpop.f32.mrb[0].mxu0 }
 0x1c9   :  { %v264_v10 = vmul.f32 0.03125, %v260_v9  ;;  %v497_v11 = vpop.f32.mrb[1].mxu0 }
 0x1cb   :  { %v265_v12 = vmul.f32 %v264_v10, %v264_v10 }
 0x1cd   :  { %v267_v13 = vrot.slane %v265_v12, 7 }
 0x1cf   :  { %v269_v14 = vsub.f32 %v264_v10, %v267_v13 }
 0x1d1   :  { %v270_v15 = vadd.f32 1e-05, %v269_v14 }
 0x1d3   :  { %535 = vrsqrt.f32 %v270_v15 }
 0x1dd   :  { %v536_v16 = vpop.eup %535 }
 0x1de   :  { %v272_v17 = vsel %vm173_vm3, %v264_v10, %v536_v16 }
 0x1df   :  { %v273_v18 = vsel %vm142_vm2, %v272_v17, %v264_v10 }
 0x1e0   :  { %v274_v19 = vsel %vm176_vm4, %v273_v18, %v536_v16 }
 0x1e1   :  { %501 = vmatmul.mubr.msk.f32.vlgmr.msra.gmra.mrb[8].mxu1 %vm276_vm5, %v274_v19 }
 0x2b4   :  { %v346_v28 = vpop.f32.mrb[8].mxu1 }
 0x2b5   :  { %v354_v29 = vmul.f32 %v352_v24, %v346_v28  ;;  %v365_v30 = vmul.f32 %v363_v25, %v346_v28  ;;  %v502_v32 = vpop.f32.mrb[9].mxu1 }
 0x2b7   :  { %v357_v33 = vrot.slane %v354_v29, 1  ;;  %v368_v34 = vrot.slane %v365_v30, 1  ;;  %v378_v35 = vrot.slane %v354_v29, %v377_v26  ;;  %v388_v36 = vrot.slane %v365_v30, %v387_v27 }
 0x2b9   :  { %v359_v39 = vmul.f32 %v357_v33, %v346_v28  ;;  %v370_v40 = vmul.f32 %v368_v34, %v346_v28  ;;  %v389_v41 = vmul.f32 %v388_v36, %v676_v44  ;;  %v379_v42 = vmul.f32 %v378_v35, %v669_v31 }
 0x2bb   :  { %v360_v45 = vsub.f32 %v355_v37, %v359_v39  ;;  %v372_v46 = vrot.slane %v370_v40, 2 }
 0x2bd   :  { %v374_v47 = vsub.f32 %v366_v43, %v372_v46  ;;  %v383_v48 = vrot.slane %v360_v45, %v382_v38 }
 0x2bf   :  { %v384_v49 = vadd.f32 %v383_v48, %v379_v42  ;;  %v393_v50 = vrot.slane %v374_v47, %v382_v38 }
 0x2c1   :  { %v394_v51 = vadd.f32 %v393_v50, %v389_v41 }
 0x2c3   :  { %v395_v52 = vmul.f32 0.5, %v394_v51 }
 0x2c5   :  { %537 = vtanh.f32 %v395_v52 }
 0x2cf   :  { %v538_v53 = vpop.eup %537 }
 0x2d0   :  { %v397_v54 = vadd.f32 1.0, %v538_v53 }
 0x2d2   :  { %v398_v44 = vmul.f32 0.5, %v397_v54 }
 0x2d4   :  { %v399_v55 = vmul.f32 %v398_v44, %v384_v49 }
 0x2d6   :  { %400 = vst [vmem:[#allocation2] sm:$0x3] %v399_v55 }
 0x2d7   :  { %550 = shalt.err (!%p547_p4)
}
 0x2d8   :  { %s551_s21 = scalar_lea.hbm %s724_s6, 32 }
 0x2d9   :  { %p552_p5 = scmp.ne.s32.totalorder %s724_s6, %s551_s21  ;;  %p555_p6 = scmp.lt.u32.totalorder %s551_s21, %s724_s6 }
 0x2db   :  { %p557_p7 = pnand %p555_p6, %p552_p5 }
 0x2dd   :  { %560 = shalt.err (!%p557_p7)
}
 0x2de   :  { %410 = dma.vmem_to_hbm [thread:$0]  %s408_s18, 32, %s724_s6, [#allocation3]  }
 0x2df   :  { %561 = dma.done.wait [#allocation3], 32  }
 0x2e0   :  { %562 = vsyncadd [#allocation3], 4294967264 }
 0x2e1   :  { %414 = vsyncpa [#allocation3], 1 }

</bundles_post_ra>
